<compile_context>
chip_gen: v7x
topology: tpu7x:2x2x1
jax: 0.10.0
libtpu: 0.0.40
codegen_flags: <defaults>
</compile_context>

<pallas_src>
import functools

import jax
import jax.numpy as jnp
from jax.experimental import pallas as pl
from jax.experimental.pallas import tpu as pltpu

# ---- problem sizes implied by the module ---------------------------------
N_OBS = 3        # Pendulum-v1 observation_space.shape[0]
N_ACTIONS = 5    # len(np.linspace(low, high, 5))
HIDDEN = 128

A_PAD = 8        # action (sublane) dim padded 5 -> 8
LANE = 128       # lane width; batch is padded to a multiple of this


def _round_up(n, m):
    return ((n + m - 1) // m) * m


def _pick_tile(b_pad):
    """Largest batch tile in {512, 256, 128} that divides b_pad.

    Per 128-col step the compute is tiny, so grid steps are dominated by the
    ~0.35 us fixed overhead -> prefer big tiles.  But keep >= 2 grid steps
    whenever b_pad >= 256 so v7x's two TensorCores both get work along the
    "parallel" axis (costs one extra ~0.35 us step on single-TC v5e/v6e).
    """
    for tb in (512, 256, 128):
        if b_pad % tb == 0 and (b_pad == LANE or b_pad // tb >= 2):
            return tb
    return LANE


def dqn_mlp_kernel(x_ref, w1_ref, b1_ref, w2_ref, b2_ref, w3_ref, b3_ref, out_ref):
    """Fused MLP forward for one batch tile, batch-on-lanes. All VMEM-resident."""
    x_t = x_ref[...]                                    # (N_OBS, TB) f32
    tb = x_t.shape[1]

    # Layer 1: K = N_OBS = 3 -> three VPU outer-product FMAs (an MXU matmul
    # with K=3 would use <1% of the array).
    h1 = jnp.broadcast_to(b1_ref[...], (HIDDEN, tb))
    for k in range(N_OBS):
        h1 = h1 + w1_ref[:, k:k + 1] * x_t[k:k + 1, :]
    h1 = jnp.maximum(h1, 0.0)

    # Layer 2: (128,128) @ (128,TB) MXU matmul, f32 accumulation.
    h2 = jnp.dot(w2_ref[...], h1, preferred_element_type=jnp.float32) + b2_ref[...]
    h2 = jnp.maximum(h2, 0.0)

    # Layer 3: (8,128) @ (128,TB); actions padded 5->8 on sublanes, batch stays
    # lane-dense, so the output write-back is only (8,TB).
    out_ref[...] = (
        jnp.dot(w3_ref[...], h2, preferred_element_type=jnp.float32) + b3_ref[...]
    )


def prepare_padded_params(params):
    """One-time transpose/pad of parameters to TPU-friendly layouts.

    Call once (after init / after each optimizer step) and reuse for every
    forward call — keeps the per-call XLA op count minimal.
    """
    w1, b1, w2, b2, w3, b3 = params
    w1_t = jnp.asarray(w1, jnp.float32).T                       # (128, 3)
    b1_t = jnp.asarray(b1, jnp.float32).reshape(HIDDEN, 1)      # (128, 1)
    w2_t = jnp.asarray(w2, jnp.float32).T                       # (128, 128)
    b2_t = jnp.asarray(b2, jnp.float32).reshape(HIDDEN, 1)      # (128, 1)
    w3_t = (jnp.zeros((A_PAD, HIDDEN), jnp.float32)
            .at[:N_ACTIONS, :].set(jnp.asarray(w3, jnp.float32).T))   # (8, 128)
    b3_t = (jnp.zeros((A_PAD, 1), jnp.float32)
            .at[:N_ACTIONS, 0].set(jnp.asarray(b3, jnp.float32)))     # (8, 1)
    return (w1_t, b1_t, w2_t, b2_t, w3_t, b3_t)


@jax.jit
def _dqn_forward_padded(x_t, padded_params):
    """x_t: (N_OBS, b_pad) f32, b_pad a multiple of 128. Returns (b_pad, N_ACTIONS)."""
    w1_t, b1_t, w2_t, b2_t, w3_t, b3_t = padded_params
    b_pad = x_t.shape[1]
    tb = _pick_tile(b_pad)
    grid = (b_pad // tb,)

    inv = lambda shape: pl.BlockSpec(shape, lambda i: (0, 0))   # grid-invariant blocks

    out_t = pl.pallas_call(
        dqn_mlp_kernel,
        out_shape=jax.ShapeDtypeStruct((A_PAD, b_pad), jnp.float32),
        grid=grid,
        in_specs=[
            pl.BlockSpec((N_OBS, tb), lambda i: (0, i)),   # x^T: batch tiled on lanes
            inv((HIDDEN, N_OBS)),                          # w1^T
            inv((HIDDEN, 1)),                              # b1
            inv((HIDDEN, HIDDEN)),                         # w2^T
            inv((HIDDEN, 1)),                              # b2
            inv((A_PAD, HIDDEN)),                          # w3^T (padded to 8 rows)
            inv((A_PAD, 1)),                               # b3 (padded)
        ],
        out_specs=pl.BlockSpec((A_PAD, tb), lambda i: (0, i)),
        compiler_params=pltpu.CompilerParams(
            dimension_semantics=("parallel",),             # shards over 2 TCs on v7x
        ),
    )(x_t, w1_t, b1_t, w2_t, b2_t, w3_t, b3_t)

    # Compact slice + transpose (tiny: 5 x b_pad) fused into the same jit.
    return out_t[:N_ACTIONS, :].T


def dqn_forward(x, padded_params):
    """x: [B, N_OBS] -> [B, N_ACTIONS] float32."""
    x = jnp.asarray(x, jnp.float32)
    B = x.shape[0]
    b_pad = _round_up(max(B, 1), LANE)
    # Pad/transpose only the input; compilation keys on b_pad, not the exact B,
    # so acting (B=1) and training (B=BATCH_SIZE) paths each compile once.
    x_t = jnp.zeros((N_OBS, b_pad), jnp.float32).at[:, :B].set(x.T)
    out = _dqn_forward_padded(x_t, padded_params)          # (b_pad, N_ACTIONS)
    return out[:B]


def init_params(key):
    """Deterministic init mirroring torch.nn.Linear (uniform +/- 1/sqrt(fan_in))."""
    ks = jax.random.split(key, 6)

    def linear(kw, kb, fan_in, fan_out):
        bound = 1.0 / jnp.sqrt(jnp.float32(fan_in))
        w = jax.random.uniform(kw, (fan_in, fan_out), jnp.float32, -bound, bound)
        b = jax.random.uniform(kb, (fan_out,), jnp.float32, -bound, bound)
        return w, b

    w1, b1 = linear(ks[0], ks[1], N_OBS, HIDDEN)
    w2, b2 = linear(ks[2], ks[3], HIDDEN, HIDDEN)
    w3, b3 = linear(ks[4], ks[5], HIDDEN, N_ACTIONS)
    return (w1, b1, w2, b2, w3, b3)


def reference_forward(x, params):
    w1, b1, w2, b2, w3, b3 = params
    hi = jax.lax.Precision.HIGHEST
    h1 = jnp.maximum(jnp.dot(x, w1, precision=hi) + b1, 0.0)
    h2 = jnp.maximum(jnp.dot(h1, w2, precision=hi) + b2, 0.0)
    return jnp.dot(h2, w3, precision=hi) + b3


if __name__ == "__main__":
    key = jax.random.PRNGKey(0)
    k_param, k_x = jax.random.split(key)

    params = init_params(k_param)
    padded_params = prepare_padded_params(params)   # hoisted: pad once, reuse

    # acting-style small batch (single 128-lane tile)
    batch = 2
    x = jax.random.normal(k_x, (batch, N_OBS), jnp.float32)
    out = jax.block_until_ready(dqn_forward(x, padded_params))
    ref = reference_forward(x, params)
    assert out.shape == (batch, N_ACTIONS), out.shape
    assert jnp.allclose(out, ref, atol=1e-3, rtol=1e-3), (out, ref)

    # ragged replay batch (b_pad=384 -> tb=128, grid=3)
    xb = jax.random.normal(jax.random.PRNGKey(1), (300, N_OBS), jnp.float32)
    out_b = jax.block_until_ready(dqn_forward(xb, padded_params))
    ref_b = reference_forward(xb, params)
    assert out_b.shape == (300, N_ACTIONS)
    assert jnp.allclose(out_b, ref_b, atol=1e-3, rtol=1e-3)

    # large replay batch (b_pad=1024 -> tb=512, grid=2: both v7x TCs busy)
    xc = jax.random.normal(jax.random.PRNGKey(2), (1024, N_OBS), jnp.float32)
    out_c = jax.block_until_ready(dqn_forward(xc, padded_params))
    ref_c = reference_forward(xc, params)
    assert out_c.shape == (1024, N_ACTIONS)
    assert jnp.allclose(out_c, ref_c, atol=1e-3, rtol=1e-3)

    print("KERNEL_OK")
</pallas_src>

<mosaic_0001>
module attributes {stable_mosaic.version = 11 : i64} {
  func.func @dqn_mlp_kernel(%arg0: i32, %arg1: memref<3x128xf32, #tpu.memory_space<vmem>>, %arg2: memref<128x3xf32, #tpu.memory_space<vmem>>, %arg3: memref<128x1xf32, #tpu.memory_space<vmem>>, %arg4: memref<128x128xf32, #tpu.memory_space<vmem>>, %arg5: memref<128x1xf32, #tpu.memory_space<vmem>>, %arg6: memref<8x128xf32, #tpu.memory_space<vmem>>, %arg7: memref<8x1xf32, #tpu.memory_space<vmem>>, %arg8: memref<8x128xf32, #tpu.memory_space<vmem>>) attributes {dimension_semantics = [#tpu.dimension_semantics<parallel>], iteration_bounds = array<i64: 1>, scalar_prefetch = 0 : i64, scratch_operands = 0 : i64, tpu.core_type = #tpu.core_type<tc>, window_params = [{transform_indices = @transform_0, window_bounds = array<i64: 3, 128>}, {pipeline_mode = #tpu.pipeline_mode<synchronous>, transform_indices = @transform_1, window_bounds = array<i64: 128, 3>}, {pipeline_mode = #tpu.pipeline_mode<synchronous>, transform_indices = @transform_2, window_bounds = array<i64: 128, 1>}, {pipeline_mode = #tpu.pipeline_mode<synchronous>, transform_indices = @transform_3, window_bounds = array<i64: 128, 128>}, {pipeline_mode = #tpu.pipeline_mode<synchronous>, transform_indices = @transform_4, window_bounds = array<i64: 128, 1>}, {pipeline_mode = #tpu.pipeline_mode<synchronous>, transform_indices = @transform_5, window_bounds = array<i64: 8, 128>}, {pipeline_mode = #tpu.pipeline_mode<synchronous>, transform_indices = @transform_6, window_bounds = array<i64: 8, 1>}, {transform_indices = @transform_7, window_bounds = array<i64: 8, 128>}]} {
    %c0 = arith.constant 0 : index
    %c0_0 = arith.constant 0 : index
    %0 = vector.load %arg1[%c0, %c0_0] : memref<3x128xf32, #tpu.memory_space<vmem>>, vector<3x128xf32>
    %c0_1 = arith.constant 0 : index
    %c0_2 = arith.constant 0 : index
    %1 = vector.load %arg3[%c0_1, %c0_2] : memref<128x1xf32, #tpu.memory_space<vmem>>, vector<128x1xf32>
    %2 = vector.shape_cast %1 : vector<128x1xf32> to vector<128x1xf32>
    %3 = vector.broadcast %2 : vector<128x1xf32> to vector<128x128xf32>
    %c0_3 = arith.constant 0 : index
    %c0_4 = arith.constant 0 : index
    %4 = vector.load %arg2[%c0_3, %c0_4] : memref<128x3xf32, #tpu.memory_space<vmem>>, vector<128x1xf32>
    %5 = vector.extract_strided_slice %0 {offsets = [0, 0], sizes = [1, 128], strides = [1, 1]} : vector<3x128xf32> to vector<1x128xf32>
    %6 = vector.broadcast %4 : vector<128x1xf32> to vector<128x128xf32>
    %7 = vector.broadcast %5 : vector<1x128xf32> to vector<128x128xf32>
    %8 = arith.mulf %6, %7 : vector<128x128xf32>
    %9 = arith.addf %3, %8 : vector<128x128xf32>
    %c0_5 = arith.constant 0 : index
    %c1 = arith.constant 1 : index
    %10 = vector.load %arg2[%c0_5, %c1] : memref<128x3xf32, #tpu.memory_space<vmem>>, vector<128x1xf32>
    %11 = vector.extract_strided_slice %0 {offsets = [1, 0], sizes = [1, 128], strides = [1, 1]} : vector<3x128xf32> to vector<1x128xf32>
    %12 = vector.broadcast %10 : vector<128x1xf32> to vector<128x128xf32>
    %13 = vector.broadcast %11 : vector<1x128xf32> to vector<128x128xf32>
    %14 = arith.mulf %12, %13 : vector<128x128xf32>
    %15 = arith.addf %9, %14 : vector<128x128xf32>
    %c0_6 = arith.constant 0 : index
    %c2 = arith.constant 2 : index
    %16 = vector.load %arg2[%c0_6, %c2] : memref<128x3xf32, #tpu.memory_space<vmem>>, vector<128x1xf32>
    %17 = vector.extract_strided_slice %0 {offsets = [2, 0], sizes = [1, 128], strides = [1, 1]} : vector<3x128xf32> to vector<1x128xf32>
    %18 = vector.broadcast %16 : vector<128x1xf32> to vector<128x128xf32>
    %19 = vector.broadcast %17 : vector<1x128xf32> to vector<128x128xf32>
    %20 = arith.mulf %18, %19 : vector<128x128xf32>
    %21 = arith.addf %15, %20 : vector<128x128xf32>
    %cst = arith.constant 0.000000e+00 : f32
    %22 = vector.broadcast %cst : f32 to vector<128x128xf32>
    %23 = arith.maximumf %21, %22 : vector<128x128xf32>
    %c0_7 = arith.constant 0 : index
    %c0_8 = arith.constant 0 : index
    %24 = vector.load %arg4[%c0_7, %c0_8] : memref<128x128xf32, #tpu.memory_space<vmem>>, vector<128x128xf32>
    %cst_9 = arith.constant dense<0.000000e+00> : vector<128x128xf32>
    %25 = tpu.matmul %24, %23, %cst_9 {dimension_numbers = #tpu.dot_dimension_numbers<[1], [0], [0], [1], [0, 0, 1, 1], [], []>} : vector<128x128xf32>, vector<128x128xf32>, vector<128x128xf32> -> vector<128x128xf32>
    %c0_10 = arith.constant 0 : index
    %c0_11 = arith.constant 0 : index
    %26 = vector.load %arg5[%c0_10, %c0_11] : memref<128x1xf32, #tpu.memory_space<vmem>>, vector<128x1xf32>
    %27 = vector.broadcast %26 : vector<128x1xf32> to vector<128x128xf32>
    %28 = arith.addf %25, %27 : vector<128x128xf32>
    %cst_12 = arith.constant 0.000000e+00 : f32
    %29 = vector.broadcast %cst_12 : f32 to vector<128x128xf32>
    %30 = arith.maximumf %28, %29 : vector<128x128xf32>
    %c0_13 = arith.constant 0 : index
    %c0_14 = arith.constant 0 : index
    %31 = vector.load %arg6[%c0_13, %c0_14] : memref<8x128xf32, #tpu.memory_space<vmem>>, vector<8x128xf32>
    %cst_15 = arith.constant dense<0.000000e+00> : vector<8x128xf32>
    %32 = tpu.matmul %31, %30, %cst_15 {dimension_numbers = #tpu.dot_dimension_numbers<[1], [0], [0], [1], [0, 0, 1, 1], [], []>} : vector<8x128xf32>, vector<128x128xf32>, vector<8x128xf32> -> vector<8x128xf32>
    %c0_16 = arith.constant 0 : index
    %c0_17 = arith.constant 0 : index
    %33 = vector.load %arg7[%c0_16, %c0_17] : memref<8x1xf32, #tpu.memory_space<vmem>>, vector<8x1xf32>
    %34 = vector.broadcast %33 : vector<8x1xf32> to vector<8x128xf32>
    %35 = arith.addf %32, %34 : vector<8x128xf32>
    %c0_18 = arith.constant 0 : index
    %c0_19 = arith.constant 0 : index
    %36 = vector.load %arg8[%c0_18, %c0_19] : memref<8x128xf32, #tpu.memory_space<vmem>>, vector<8x128xf32>
    tpu.vector_store %arg8[%c0_18, %c0_19], %35 {strides = array<i32>} : memref<8x128xf32, #tpu.memory_space<vmem>>, vector<8x128xf32>,
    return
  }
  func.func @transform_0(%arg0: i32) -> (i32, i32) {
    %c0_i32 = arith.constant 0 : i32
    %c0_i32_0 = arith.constant 0 : i32
    return %c0_i32, %arg0 : i32, i32
  }
  func.func @transform_1(%arg0: i32) -> (i32, i32) {
    %c0_i32 = arith.constant 0 : i32
    %c0_i32_0 = arith.constant 0 : i32
    %c0_i32_1 = arith.constant 0 : i32
    return %c0_i32, %c0_i32_0 : i32, i32
  }
  func.func @transform_2(%arg0: i32) -> (i32, i32) {
    %c0_i32 = arith.constant 0 : i32
    %c0_i32_0 = arith.constant 0 : i32
    %c0_i32_1 = arith.constant 0 : i32
    return %c0_i32, %c0_i32_0 : i32, i32
  }
  func.func @transform_3(%arg0: i32) -> (i32, i32) {
    %c0_i32 = arith.constant 0 : i32
    %c0_i32_0 = arith.constant 0 : i32
    %c0_i32_1 = arith.constant 0 : i32
    return %c0_i32, %c0_i32_0 : i32, i32
  }
  func.func @transform_4(%arg0: i32) -> (i32, i32) {
    %c0_i32 = arith.constant 0 : i32
    %c0_i32_0 = arith.constant 0 : i32
    %c0_i32_1 = arith.constant 0 : i32
    return %c0_i32, %c0_i32_0 : i32, i32
  }
  func.func @transform_5(%arg0: i32) -> (i32, i32) {
    %c0_i32 = arith.constant 0 : i32
    %c0_i32_0 = arith.constant 0 : i32
    %c0_i32_1 = arith.constant 0 : i32
    return %c0_i32, %c0_i32_0 : i32, i32
  }
  func.func @transform_6(%arg0: i32) -> (i32, i32) {
    %c0_i32 = arith.constant 0 : i32
    %c0_i32_0 = arith.constant 0 : i32
    %c0_i32_1 = arith.constant 0 : i32
    return %c0_i32, %c0_i32_0 : i32, i32
  }
  func.func @transform_7(%arg0: i32) -> (i32, i32) {
    %c0_i32 = arith.constant 0 : i32
    %c0_i32_0 = arith.constant 0 : i32
    return %c0_i32, %arg0 : i32, i32
  }
}

</mosaic_0001>

<bundles_post_ra>
// kernel: _dqn_forward_padded.1
= control target key start
LH: loop header
LB: loop body
LE: loop exit
PB: predicated region body
PF: predicated region fallthrough
CT: control target
= control target key end

     0   :  { %v1064_v0 = vmov 0   ;;  %v1065_v6 = vmov 1   ;;  %v1066_v11 = vmov 2   ;;  %v219_v57 = vlaneseq  ;;  %s1501_s2 = inlined_call_operand.vmem [shape: f32[128,1], index: 2, kind: input, shape index: {}]   ;;  %s1502_s1 = inlined_call_operand.vmem [shape: f32[128,3], index: 1, kind: input, shape index: {}]   ;;  %s1503_s0 = inlined_call_operand.vmem [shape: f32[3,128], index: 0, kind: input, shape index: {}]   ;;  %s1504_s3 = inlined_call_operand.vmem [shape: f32[128,128], index: 3, kind: input, shape index: {}]   ;;  %s1505_s4 = inlined_call_operand.vmem [shape: f32[128,1], index: 4, kind: input, shape index: {}]   ;;  %s1506_s6 = inlined_call_operand.vmem [shape: f32[8,1], index: 6, kind: input, shape index: {}]   ;;  %s1507_s5 = inlined_call_operand.vmem [shape: f32[8,128], index: 5, kind: input, shape index: {}]   ;;  %s1508_s7 = inlined_call_operand.vmem [shape: f32[8,128], index: 7, kind: output, shape index: {}]  }
   0x1   :  { %1029 = vset.pattern.permute.xlu1 %v1064_v0  ;;  %1028 = vset.pattern.permute.xlu0 %v1064_v0  ;;  %v27_v1 = vld [vmem:[%s1501_s2] sm:$0xff]  ;;  %v28_v3 = vld [vmem:[%s1501_s2 + $0x8] sm:$0xff]  ;;  %v126_v5 = vld [vmem:[%s1502_s1 + $0x18] sm:$0xff]  ;;  %vm1068_vm0 = vmmov 0  }
   0x2   :  { %v1118_v2 = vld [vmem:[%s1502_s1] sm:$0xff]  ;;  %45 = vperm.xlu1 %1029, %v27_v1   ;;  %v124_v4 = vld [vmem:[%s1502_s1 + $0x8] sm:$0xff]  ;;  %v29_v7 = vld [vmem:[%s1501_s2 + $0x10] sm:$0xff]  ;;  %v220_v60 = vshrl.u32 %v219_v57, 7 }
   0x3   :  { %141 = vperm.xlu0 %1028, %v1118_v2   ;;  %v125_v8 = vld [vmem:[%s1502_s1 + $0x10] sm:$0xff]  ;;  %v128_v9 = vld [vmem:[%s1502_s1 + $0x28] sm:$0xff]  ;;  %v31_v10 = vld [vmem:[%s1501_s2 + $0x20] sm:$0xff] }
   0x4   :  { %v1149_v12 = vld [vmem:[%s1502_s1 + $0x38] sm:$0xff]  ;;  %v33_v14 = vld [vmem:[%s1501_s2 + $0x30] sm:$0xff]  ;;  %v1162_v15 = vld [vmem:[%s1502_s1 + $0x48] sm:$0xff]  ;;  %v221_v63 = vsub.s32 0, %v220_v60  ;;  %v321_v1 = vsub.s32 1, %v220_v60 }
   0x5   :  { %v30_v13 = vld [vmem:[%s1501_s2 + $0x18] sm:$0xff]  ;;  %v35_v16 = vld [vmem:[%s1501_s2 + $0x40] sm:$0xff]  ;;  %v37_v19 = vld [vmem:[%s1501_s2 + $0x50] sm:$0xff] }
   0x6   :  { %50 = vperm.xlu1 %1029, %v28_v3   ;;  %v127_v17 = vld [vmem:[%s1502_s1 + $0x20] sm:$0xff]  ;;  %v1176_v18 = vld [vmem:[%s1502_s1 + $0x58] sm:$0xff]  ;;  %v1186_v20 = vld [vmem:[%s1502_s1 + $0x68] sm:$0xff] }
   0x7   :  { %146 = vperm.xlu0 %1028, %v124_v4   ;;  %v32_v21 = vld [vmem:[%s1501_s2 + $0x28] sm:$0xff]  ;;  %v39_v22 = vld [vmem:[%s1501_s2 + $0x60] sm:$0xff]  ;;  %v1199_v23 = vld [vmem:[%s1502_s1 + $0x78] sm:$0xff] }
   0x8   :  { %v41_v24 = vld [vmem:[%s1501_s2 + $0x70] sm:$0xff]  ;;  %v34_v26 = vld [vmem:[%s1501_s2 + $0x38] sm:$0xff]  ;;  %v131_v27 = vld [vmem:[%s1502_s1 + $0x40] sm:$0xff] }
   0x9   :  { %v129_v25 = vld [vmem:[%s1502_s1 + $0x30] sm:$0xff]  ;;  %v135_v29 = vld [vmem:[%s1502_s1 + $0x60] sm:$0xff]  ;;  %v36_v31 = vld [vmem:[%s1501_s2 + $0x48] sm:$0xff] }
   0xa   :  { %1030 = vset.pattern.permute.xlu1 %v1065_v6  ;;  %v133_v28 = vld [vmem:[%s1502_s1 + $0x50] sm:$0xff]  ;;  %v38_v32 = vld [vmem:[%s1501_s2 + $0x58] sm:$0xff]  ;;  %v40_v42 = vld [vmem:[%s1501_s2 + $0x68] sm:$0xff] }
   0xb   :  { %156 = vperm.xlu0 %1028, %v126_v5   ;;  %260 = vperm.xlu1 %1030, %v124_v4   ;;  %v1233_v30 = vld [vmem:[%s1502_s1 + $0x70] sm:$0xff]  ;;  %v42_v54 = vld [vmem:[%s1501_s2 + $0x78] sm:$0xff] }
   0xf   :  { %55 = vperm.xlu0 %1028, %v29_v7   ;;  %1031 = vset.pattern.permute.xlu1 %v1064_v0 }
  0x10   :  { %151 = vperm.xlu1 %1031, %v125_v8  }
  0x13   :  { %166 = vperm.xlu0 %1028, %v128_v9  }
  0x14   :  { %1032 = vset.pattern.permute.xlu1 %v1066_v11 }
  0x15   :  { %356 = vperm.xlu1 %1032, %v1118_v2  }
  0x17   :  { %65 = vperm.xlu0 %1028, %v31_v10  }
  0x19   :  { %360 = vperm.xlu1 %1032, %v124_v4  }
  0x1b   :  { %176 = vperm.xlu0 %1028, %v1149_v12  }
  0x1d   :  { %1033 = vset.pattern.permute.xlu1 %v1064_v0 }
  0x1e   :  { %60 = vperm.xlu1 %1033, %v30_v13  }
  0x1f   :  { %75 = vperm.xlu0 %1028, %v33_v14  }
  0x22   :  { %1034 = vset.pattern.permute.xlu1 %v1065_v6 }
  0x23   :  { %186 = vperm.xlu0 %1028, %v1162_v15   ;;  %268 = vperm.xlu1 %1034, %v126_v5  }
  0x27   :  { %85 = vperm.xlu0 %1028, %v35_v16   ;;  %1035 = vset.pattern.permute.xlu1 %v1064_v0 }
  0x28   :  { %161 = vperm.xlu1 %1035, %v127_v17  }
  0x2b   :  { %196 = vperm.xlu0 %1028, %v1176_v18  }
  0x2c   :  { %1036 = vset.pattern.permute.xlu1 %v1066_v11 }
  0x2d   :  { %364 = vperm.xlu1 %1036, %v125_v8  }
  0x2f   :  { %95 = vperm.xlu0 %1028, %v37_v19   ;;  %v471_v19 = vld [vmem:[%s1504_s3] sm:$0xff] }
  0x30   :  { %907 = vmatprep.mubr.f32.mxu0 %v471_v19 }
  0x31   :  { %368 = vperm.xlu1 %1036, %v126_v5  }
  0x33   :  { %206 = vperm.xlu0 %1028, %v1186_v20  }
  0x35   :  { %1037 = vset.pattern.permute.xlu1 %v1064_v0 }
  0x36   :  { %70 = vperm.xlu1 %1037, %v32_v21  }
  0x37   :  { %105 = vperm.xlu0 %1028, %v39_v22  }
  0x3a   :  { %1038 = vset.pattern.permute.xlu1 %v1065_v6 }
  0x3b   :  { %216 = vperm.xlu0 %1028, %v1199_v23   ;;  %276 = vperm.xlu1 %1038, %v128_v9  }
  0x3f   :  { %115 = vperm.xlu0 %1028, %v41_v24   ;;  %1039 = vset.pattern.permute.xlu1 %v1064_v0 }
  0x40   :  { %171 = vperm.xlu1 %1039, %v129_v25  }
  0x43   :  { %1057 = vset.pattern.permute.xlu0 %v1065_v6 }
  0x44   :  { %256 = vperm.xlu0 %1057, %v1118_v2   ;;  %1040 = vset.pattern.permute.xlu1 %v1066_v11  ;;  %v26_v2 = vld [vmem:[%s1503_s0] sm:$0x7] }
  0x45   :  { %372 = vperm.xlu1 %1040, %v127_v17   ;;  %v1313_v4 = vrot.slane %v26_v2, %v221_v63  ;;  %v1315_v5 = vrot.slane %v26_v2, %v321_v1 }
  0x48   :  { %264 = vperm.xlu0 %1057, %v125_v8  }
  0x49   :  { %376 = vperm.xlu1 %1040, %v128_v9  }
  0x4c   :  { %272 = vperm.xlu0 %1057, %v127_v17  }
  0x4d   :  { %1041 = vset.pattern.permute.xlu1 %v1064_v0 }
  0x4e   :  { %80 = vperm.xlu1 %1041, %v34_v26  }
  0x50   :  { %280 = vperm.xlu0 %1057, %v129_v25  }
  0x52   :  { %1042 = vset.pattern.permute.xlu1 %v1065_v6 }
  0x53   :  { %284 = vperm.xlu1 %1042, %v1149_v12  }
  0x54   :  { %288 = vperm.xlu0 %1057, %v131_v27  }
  0x57   :  { %1043 = vset.pattern.permute.xlu1 %v1064_v0 }
  0x58   :  { %296 = vperm.xlu0 %1057, %v133_v28   ;;  %181 = vperm.xlu1 %1043, %v131_v27  }
  0x5c   :  { %304 = vperm.xlu0 %1057, %v135_v29   ;;  %1044 = vset.pattern.permute.xlu1 %v1066_v11 }
  0x5d   :  { %380 = vperm.xlu1 %1044, %v129_v25  }
  0x60   :  { %312 = vperm.xlu0 %1057, %v1233_v30  }
  0x61   :  { %384 = vperm.xlu1 %1044, %v1149_v12  }
  0x64   :  { %1061 = vset.pattern.permute.xlu0 %v1066_v11 }
  0x65   :  { %416 = vperm.xlu0 %1061, %v1199_v23   ;;  %1045 = vset.pattern.permute.xlu1 %v1064_v0 }
  0x66   :  { %90 = vperm.xlu1 %1045, %v36_v31  }
  0x69   :  { %1063 = vset.pattern.permute.xlu0 %v1064_v0 }
  0x6a   :  { %1046 = vset.pattern.permute.xlu1 %v1065_v6 }
  0x6b   :  { %292 = vperm.xlu1 %1046, %v1162_v15  }
  0x6f   :  { %1047 = vset.pattern.permute.xlu1 %v1064_v0 }
  0x70   :  { %191 = vperm.xlu1 %1047, %v133_v28  }
  0x74   :  { %1048 = vset.pattern.permute.xlu1 %v1066_v11 }
  0x75   :  { %388 = vperm.xlu1 %1048, %v131_v27  }
  0x79   :  { %392 = vperm.xlu1 %1048, %v1162_v15  }
  0x7d   :  { %1049 = vset.pattern.permute.xlu1 %v1064_v0 }
  0x7e   :  { %100 = vperm.xlu1 %1049, %v38_v32  }
  0x81   :  { %v1253_v33 = vpop.permute.xlu1 %45 }
  0x82   :  { %v1255_v34 = vpop.permute.xlu0 %141  ;;  %1050 = vset.pattern.permute.xlu1 %v1065_v6 }
  0x83   :  { %300 = vperm.xlu1 %1050, %v1176_v18  }
  0x85   :  { %v1259_v35 = vpop.permute.xlu1 %50 }
  0x86   :  { %v147_v36 = vpop.permute.xlu0 %146 }
  0x87   :  { %1051 = vset.pattern.permute.xlu1 %v1064_v0  ;;  %v224_v8 = vmul.f32 %v1313_v4, %v147_v36 }
  0x88   :  { %201 = vperm.xlu1 %1051, %v135_v29  }
  0x89   :  { %v240_v14 = vadd.f32 %v224_v8, %v1259_v35 }
  0x8a   :  { %v157_v37 = vpop.permute.xlu0 %156  ;;  %v261_v38 = vpop.permute.xlu1 %260 }
  0x8b   :  { %v324_v10 = vmul.f32 %v1315_v5, %v261_v38  ;;  %v226_v15 = vmul.f32 %v1313_v4, %v157_v37 }
  0x8c   :  { %1052 = vset.pattern.permute.xlu1 %v1066_v11 }
  0x8d   :  { %396 = vperm.xlu1 %1052, %v133_v28   ;;  %v340_v17 = vadd.f32 %v324_v10, %v240_v14 }
  0x8e   :  { %v1263_v39 = vpop.permute.xlu0 %55 }
  0x8f   :  { %v1265_v40 = vpop.permute.xlu1 %151 }
  0x90   :  { %v225_v21 = vmul.f32 %v1313_v4, %v1265_v40 }
  0x91   :  { %400 = vperm.xlu1 %1052, %v1176_v18  }
  0x92   :  { %v1268_v41 = vpop.permute.xlu0 %166 }
  0x93   :  { %v228_v27 = vmul.f32 %v1313_v4, %v1268_v41 }
  0x94   :  { %v1273_v43 = vpop.permute.xlu1 %356 }
  0x95   :  { %1053 = vset.pattern.permute.xlu1 %v1064_v0 }
  0x96   :  { %v1276_v44 = vpop.permute.xlu0 %65  ;;  %110 = vperm.xlu1 %1053, %v40_v42  }
  0x98   :  { %v361_v45 = vpop.permute.xlu1 %360 }
  0x9a   :  { %v1278_v46 = vpop.permute.xlu0 %176  ;;  %1054 = vset.pattern.permute.xlu1 %v1065_v6 }
  0x9b   :  { %308 = vperm.xlu1 %1054, %v1186_v20  }
  0x9d   :  { %v61_v47 = vpop.permute.xlu1 %60 }
  0x9e   :  { %v1282_v48 = vpop.permute.xlu0 %75  ;;  %v242_v24 = vadd.f32 %v226_v15, %v61_v47 }
  0x9f   :  { %1055 = vset.pattern.permute.xlu1 %v1064_v0 }
  0xa0   :  { %211 = vperm.xlu1 %1055, %v1233_v30  }
  0xa2   :  { %v1286_v49 = vpop.permute.xlu0 %186  ;;  %v269_v50 = vpop.permute.xlu1 %268 }
  0xa3   :  { %v326_v18 = vmul.f32 %v1315_v5, %v269_v50 }
  0xa4   :  { %1056 = vset.pattern.permute.xlu1 %v1066_v11 }
  0xa5   :  { %404 = vperm.xlu1 %1056, %v135_v29  }
  0xa6   :  { %v1289_v51 = vpop.permute.xlu0 %85 }
  0xa7   :  { %v162_v52 = vpop.permute.xlu1 %161 }
  0xa8   :  { %v227_v31 = vmul.f32 %v1313_v4, %v162_v52 }
  0xa9   :  { %408 = vperm.xlu1 %1056, %v1186_v20  }
  0xaa   :  { %v1292_v53 = vpop.permute.xlu0 %196  ;;  %v243_v50 = vadd.f32 %v227_v31, %v1276_v44 }
  0xac   :  { %v365_v55 = vpop.permute.xlu1 %364 }
  0xad   :  { %1058 = vset.pattern.permute.xlu1 %v1064_v0 }
  0xae   :  { %v1298_v56 = vpop.permute.xlu0 %95  ;;  %120 = vperm.xlu1 %1058, %v42_v54  }
  0xb0   :  { %v369_v58 = vpop.permute.xlu1 %368 }
  0xb2   :  { %v1300_v59 = vpop.permute.xlu0 %206  ;;  %1059 = vset.pattern.permute.xlu1 %v1065_v6  ;;  %v421_v6 = vsub.s32 2, %v220_v60 }
  0xb3   :  { %316 = vperm.xlu1 %1059, %v1199_v23  }
  0xb4   :  { %v1322_v12 = vrot.slane %v26_v2, %v421_v6 }
  0xb5   :  { %v71_v61 = vpop.permute.xlu1 %70 }
  0xb6   :  { %v1304_v62 = vpop.permute.xlu0 %105  ;;  %v424_v16 = vmul.f32 %v1322_v12, %v361_v45  ;;  %v426_v25 = vmul.f32 %v1322_v12, %v369_v58  ;;  %v423_v28 = vmul.f32 %v1322_v12, %v1273_v43  ;;  %v425_v38 = vmul.f32 %v1322_v12, %v365_v55 }
  0xb7   :  { %1060 = vset.pattern.permute.xlu1 %v1066_v11  ;;  %v223_v11 = vmul.f32 %v1313_v4, %v1255_v34  ;;  %v244_v42 = vadd.f32 %v228_v27, %v71_v61 }
  0xb8   :  { %412 = vperm.xlu1 %1060, %v1233_v30   ;;  %v440_v23 = vadd.f32 %v424_v16, %v340_v17  ;;  %v342_v30 = vadd.f32 %v326_v18, %v242_v24  ;;  %v230_v17 = vmul.f32 %v1313_v4, %v1278_v46  ;;  %v487_v46 = vld [vmem:[%s1505_s4] sm:$0xff] }
  0xb9   :  { %v239_v20 = vadd.f32 %v223_v11, %v1253_v33  ;;  %v241_v33 = vadd.f32 %v225_v21, %v1263_v39 }
  0xba   :  { %v1311_v3 = vpop.permute.xlu0 %216  ;;  %v277_v7 = vpop.permute.xlu1 %276  ;;  %v456_v37 = vmax.f32 %v440_v23, 0.0  ;;  %v442_v40 = vadd.f32 %v426_v25, %v342_v30 }
  0xbb   :  { %v328_v34 = vmul.f32 %v1315_v5, %v277_v7 }
  0xbc   :  { %1062 = vset.pattern.permute.xlu1 %v1064_v0  ;;  %v458_v60 = vmax.f32 %v442_v40, 0.0 }
  0xbd   :  { %v344_v54 = vadd.f32 %v328_v34, %v244_v42  ;;  %505 = vperm.xlu1 %1062, %v487_v46   ;;  %v490_v34 = vld [vmem:[%s1505_s4 + $0x18] sm:$0xff]  ;;  %v493_v42 = vld [vmem:[%s1505_s4 + $0x30] sm:$0xff] }
  0xbe   :  { %v1319_v9 = vpop.permute.xlu0 %115 }
  0xbf   :  { %v172_v13 = vpop.permute.xlu1 %171 }
  0xc0   :  { %v229_v16 = vmul.f32 %v1313_v4, %v172_v13 }
  0xc2   :  { %v245_v19 = vadd.f32 %v229_v16, %v1282_v48  ;;  %v488_v48 = vld [vmem:[%s1505_s4 + $0x8] sm:$0xff] }
  0xc3   :  { %v257_v0 = vpop.permute.xlu0 %256  ;;  %510 = vperm.xlu1 %1062, %v488_v48  }
  0xc4   :  { %v323_v22 = vmul.f32 %v1315_v5, %v257_v0  ;;  %v373_v26 = vpop.permute.xlu1 %372 }
  0xc5   :  { %v427_v63 = vmul.f32 %v1322_v12, %v373_v26 }
  0xc6   :  { %v339_v29 = vadd.f32 %v323_v22, %v239_v20 }
  0xc7   :  { %v265_v32 = vpop.permute.xlu0 %264  ;;  %520 = vperm.xlu1 %1062, %v490_v34  }
  0xc8   :  { %v325_v35 = vmul.f32 %v1315_v5, %v265_v32  ;;  %v439_v36 = vadd.f32 %v423_v28, %v339_v29  ;;  %v377_v41 = vpop.permute.xlu1 %376  ;;  %v489_v28 = vld [vmem:[%s1505_s4 + $0x10] sm:$0xff]  ;;  %v492_v32 = vld [vmem:[%s1505_s4 + $0x28] sm:$0xff] }
  0xc9   :  { %v428_v43 = vmul.f32 %v1322_v12, %v377_v41  ;;  %515 = vperm.xlu0 %1063, %v489_v28  }
  0xca   :  { %v341_v45 = vadd.f32 %v325_v35, %v241_v33  ;;  %v455_v47 = vmax.f32 %v439_v36, 0.0  ;;  %v494_v35 = vld [vmem:[%s1505_s4 + $0x38] sm:$0xff] }
  0xcb   :  { %v273_v52 = vpop.permute.xlu0 %272  ;;  %v444_v55 = vadd.f32 %v428_v43, %v344_v54  ;;  %v498_v43 = vld [vmem:[%s1505_s4 + $0x58] sm:$0xff] }
  0xcc   :  { %v441_v39 = vadd.f32 %v425_v38, %v341_v45  ;;  %v327_v57 = vmul.f32 %v1315_v5, %v273_v52  ;;  %v966_v58 = vpack.c.bf16 %v456_v37, %v455_v47  ;;  %v491_v37 = vld [vmem:[%s1505_s4 + $0x20] sm:$0xff]  ;;  %v496_v38 = vld [vmem:[%s1505_s4 + $0x48] sm:$0xff] }
  0xcd   :  { %v81_v6 = vpop.permute.xlu1 %80  ;;  %v460_v8 = vmax.f32 %v444_v55, 0.0  ;;  %530 = vperm.xlu0 %1063, %v492_v32   ;;  %525 = vperm.xlu1 %1062, %v491_v37   ;;  %v495_v52 = vld [vmem:[%s1505_s4 + $0x40] sm:$0xff] }
  0xce   :  { %v457_v1 = vmax.f32 %v441_v39, 0.0  ;;  %v343_v2 = vadd.f32 %v327_v57, %v243_v50  ;;  %967 = vmatprep.subr.bf16.mxu0 %v966_v58  ;;  %v246_v22 = vadd.f32 %v230_v17, %v81_v6  ;;  %v232_v39 = vmul.f32 %v1313_v4, %v1286_v49  ;;  %v745_v17 = vld [vmem:[%s1506_s6] sm:$0xff] }
  0xcf   :  { %969 = vmatpush3.bf16.msra.mxu0 %v966_v58  ;;  %v281_v15 = vpop.permute.xlu0 %280 }
  0xd0   :  { %v443_v61 = vadd.f32 %v427_v63, %v343_v2  ;;  %v970_v7 = vpack.c.bf16 %v458_v60, %v457_v1  ;;  %v329_v18 = vmul.f32 %v1315_v5, %v281_v15  ;;  %v500_v60 = vld [vmem:[%s1505_s4 + $0x68] sm:$0xff]  ;;  %v497_v1 = vld [vmem:[%s1505_s4 + $0x50] sm:$0xff] }
  0xd1   :  { %540 = vperm.xlu0 %1063, %v494_v35   ;;  %535 = vperm.xlu1 %1062, %v493_v42   ;;  %v501_v15 = vld [vmem:[%s1505_s4 + $0x70] sm:$0xff] }
  0xd2   :  { %v459_v10 = vmax.f32 %v443_v61, 0.0  ;;  %971 = vmatprep.subr.bf16.mxu0 %v970_v7  ;;  %v285_v44 = vpop.permute.xlu1 %284  ;;  %v345_v23 = vadd.f32 %v329_v18, %v245_v19  ;;  %v502_v61 = vld [vmem:[%s1505_s4 + $0x78] sm:$0xff] }
  0xd3   :  { %973 = vmatpush3.bf16.msra.mxu0 %v970_v7  ;;  %v330_v20 = vmul.f32 %v1315_v5, %v285_v44  ;;  %v289_v45 = vpop.permute.xlu0 %288 }
  0xd4   :  { %v974_v11 = vpack.c.bf16 %v460_v8, %v459_v10  ;;  %v331_v50 = vmul.f32 %v1315_v5, %v289_v45  ;;  %v499_v8 = vld [vmem:[%s1505_s4 + $0x60] sm:$0xff] }
  0xd5   :  { %v346_v25 = vadd.f32 %v330_v20, %v246_v22  ;;  %550 = vperm.xlu0 %1063, %v496_v38   ;;  %545 = vperm.xlu1 %1062, %v495_v52  }
  0xd6   :  { %975 = vmatprep.subr.bf16.mxu0 %v974_v11 }
  0xd7   :  { %977 = vmatpush3.bf16.msra.mxu0 %v974_v11  ;;  %v182_v14 = vpop.permute.xlu1 %181  ;;  %v297_v19 = vpop.permute.xlu0 %296 }
  0xd8   :  { %v231_v40 = vmul.f32 %v1313_v4, %v182_v14 }
  0xd9   :  { %560 = vperm.xlu0 %1063, %v498_v43   ;;  %555 = vperm.xlu1 %1062, %v497_v1  }
  0xda   :  { %v247_v47 = vadd.f32 %v231_v40, %v1289_v51  ;;  %v236_v40 = vmul.f32 %v1313_v4, %v1300_v59  ;;  %v238_v59 = vmul.f32 %v1313_v4, %v1311_v3 }
  0xdb   :  { %v305_v35 = vpop.permute.xlu0 %304 }
  0xdc   :  { %v381_v0 = vpop.permute.xlu1 %380  ;;  %v347_v51 = vadd.f32 %v331_v50, %v247_v47  ;;  %v335_v37 = vmul.f32 %v1315_v5, %v305_v35 }
  0xdd   :  { %v429_v21 = vmul.f32 %v1322_v12, %v381_v0  ;;  %570 = vperm.xlu0 %1063, %v500_v60   ;;  %565 = vperm.xlu1 %1062, %v499_v8  }
  0xdf   :  { %v445_v26 = vadd.f32 %v429_v21, %v345_v23  ;;  %v333_v21 = vmul.f32 %v1315_v5, %v297_v19  ;;  %v234_v23 = vmul.f32 %v1313_v4, %v1292_v53  ;;  %v478_v19 = vld [vmem:[%s1504_s3 + $0x38] sm:$0xff] }
  0xe0   :  { %v385_v24 = vpop.permute.xlu1 %384 }
  0xe1   :  { %v430_v27 = vmul.f32 %v1322_v12, %v385_v24  ;;  %v461_v29 = vmax.f32 %v445_v26, 0.0  ;;  %580 = vperm.xlu0 %1063, %v502_v61   ;;  %575 = vperm.xlu1 %1062, %v501_v15  }
  0xe3   :  { %v446_v13 = vadd.f32 %v430_v27, %v346_v25 }
  0xe5   :  { %v462_v30 = vmax.f32 %v446_v13, 0.0  ;;  %v91_v31 = vpop.permute.xlu1 %90  ;;  %748 = vperm.xlu1 %1062, %v745_v17   ;;  %v473_v17 = vld [vmem:[%s1504_s3 + $0x10] sm:$0xff] }
  0xe6   :  { %v248_v63 = vadd.f32 %v232_v39, %v91_v31 }
  0xe7   :  { %v978_v33 = vpack.c.bf16 %v462_v30, %v461_v29 }
  0xe9   :  { %979 = vmatprep.subr.bf16.mxu0 %v978_v33 }
  0xea   :  { %v293_v36 = vpop.permute.xlu1 %292  ;;  %981 = vmatpush3.bf16.msra.mxu0 %v978_v33 }
  0xeb   :  { %v332_v57 = vmul.f32 %v1315_v5, %v293_v36 }
  0xed   :  { %v348_v2 = vadd.f32 %v332_v57, %v248_v63  ;;  %v313_v57 = vpop.permute.xlu0 %312 }
  0xee   :  { %v337_v8 = vmul.f32 %v1315_v5, %v313_v57 }
  0xef   :  { %v192_v41 = vpop.permute.xlu1 %191 }
  0xf0   :  { %v233_v18 = vmul.f32 %v1313_v4, %v192_v41 }
  0xf1   :  { %v417_v1 = vpop.permute.xlu0 %416 }
  0xf2   :  { %v249_v20 = vadd.f32 %v233_v18, %v1298_v56  ;;  %v438_v61 = vmul.f32 %v1322_v12, %v417_v1  ;;  %v476_v18 = vld [vmem:[%s1504_s3 + $0x28] sm:$0xff] }
  0xf4   :  { %v389_v54 = vpop.permute.xlu1 %388  ;;  %v349_v26 = vadd.f32 %v333_v21, %v249_v20  ;;  %v479_v20 = vld [vmem:[%s1504_s3 + $0x40] sm:$0xff]  ;;  %v480_v21 = vld [vmem:[%s1504_s3 + $0x48] sm:$0xff] }
  0xf5   :  { %v431_v58 = vmul.f32 %v1322_v12, %v389_v54 }
  0xf7   :  { %v447_v6 = vadd.f32 %v431_v58, %v347_v51 }
  0xf8   :  { %v393_v55 = vpop.permute.xlu1 %392 }
  0xf9   :  { %v432_v49 = vmul.f32 %v1322_v12, %v393_v55  ;;  %v463_v10 = vmax.f32 %v447_v6, 0.0 }
  0xfb   :  { %v448_v7 = vadd.f32 %v432_v49, %v348_v2 }
  0xfd   :  { %v464_v44 = vmax.f32 %v448_v7, 0.0  ;;  %v101_v11 = vpop.permute.xlu1 %100 }
  0xfe   :  { %v250_v27 = vadd.f32 %v234_v23, %v101_v11  ;;  %v482_v23 = vld [vmem:[%s1504_s3 + $0x58] sm:$0xff] }
  0xff   :  { %v982_v14 = vpack.c.bf16 %v464_v44, %v463_v10 }
 0x101   :  { %983 = vmatprep.subr.bf16.mxu0 %v982_v14 }
 0x102   :  { %v301_v16 = vpop.permute.xlu1 %300  ;;  %985 = vmatpush3.bf16.msra.mxu0 %v982_v14 }
 0x103   :  { %v334_v24 = vmul.f32 %v1315_v5, %v301_v16 }
 0x105   :  { %v350_v13 = vadd.f32 %v334_v24, %v250_v27  ;;  %v483_v24 = vld [vmem:[%s1504_s3 + $0x60] sm:$0xff]  ;;  %v486_v27 = vld [vmem:[%s1504_s3 + $0x78] sm:$0xff] }
 0x107   :  { %v202_v0 = vpop.permute.xlu1 %201 }
 0x108   :  { %v235_v53 = vmul.f32 %v1313_v4, %v202_v0  ;;  %v477_v0 = vld [vmem:[%s1504_s3 + $0x30] sm:$0xff] }
 0x10a   :  { %v251_v36 = vadd.f32 %v235_v53, %v1304_v62 }
 0x10c   :  { %v397_v22 = vpop.permute.xlu1 %396  ;;  %v351_v45 = vadd.f32 %v335_v37, %v251_v36 }
 0x10d   :  { %v433_v25 = vmul.f32 %v1322_v12, %v397_v22  ;;  %v481_v22 = vld [vmem:[%s1504_s3 + $0x50] sm:$0xff] }
 0x10f   :  { %v449_v48 = vadd.f32 %v433_v25, %v349_v26  ;;  %v484_v25 = vld [vmem:[%s1504_s3 + $0x68] sm:$0xff]  ;;  %v485_v26 = vld [vmem:[%s1504_s3 + $0x70] sm:$0xff] }
 0x110   :  { %v401_v46 = vpop.permute.xlu1 %400 }
 0x111   :  { %v434_v28 = vmul.f32 %v1322_v12, %v401_v46  ;;  %v465_v30 = vmax.f32 %v449_v48, 0.0  ;;  %v1067_v46 = vmov 0.0|0.0  }
 0x112   :  { %998 = vmatprep.subr.bf16.mxu1 %v1067_v46 }
 0x113   :  { %v450_v29 = vadd.f32 %v434_v28, %v350_v13  ;;  %v1069_v13 = vmov 0.0  }
 0x114   :  { %963 = vmatprep.mubr.msk.f32.mxu1 %vm1068_vm0, %v1069_v13 }
 0x115   :  { %v466_v56 = vmax.f32 %v450_v29, 0.0  ;;  %v111_v31 = vpop.permute.xlu1 %110 }
 0x116   :  { %v252_v43 = vadd.f32 %v236_v40, %v111_v31 }
 0x117   :  { %v986_v32 = vpack.c.bf16 %v466_v56, %v465_v30 }
 0x119   :  { %987 = vmatprep.subr.bf16.mxu0 %v986_v32 }
 0x11a   :  { %v309_v33 = vpop.permute.xlu1 %308  ;;  %989 = vmatpush3.bf16.msra.mxu0 %v986_v32 }
 0x11b   :  { %v336_v41 = vmul.f32 %v1315_v5, %v309_v33 }
 0x11d   :  { %v352_v50 = vadd.f32 %v336_v41, %v252_v43 }
 0x11f   :  { %v212_v34 = vpop.permute.xlu1 %211 }
 0x120   :  { %v237_v63 = vmul.f32 %v1313_v4, %v212_v34 }
 0x122   :  { %v253_v49 = vadd.f32 %v237_v63, %v1319_v9  ;;  %v472_v9 = vld [vmem:[%s1504_s3 + $0x8] sm:$0xff] }
 0x124   :  { %v405_v38 = vpop.permute.xlu1 %404  ;;  %v353_v11 = vadd.f32 %v337_v8, %v253_v49 }
 0x125   :  { %v435_v42 = vmul.f32 %v1322_v12, %v405_v38 }
 0x127   :  { %v451_v52 = vadd.f32 %v435_v42, %v351_v45 }
 0x128   :  { %v409_v47 = vpop.permute.xlu1 %408 }
 0x129   :  { %v436_v54 = vmul.f32 %v1322_v12, %v409_v47  ;;  %v467_v62 = vmax.f32 %v451_v52, 0.0 }
 0x12b   :  { %v452_v39 = vadd.f32 %v436_v54, %v352_v50 }
 0x12d   :  { %v468_v58 = vmax.f32 %v452_v39, 0.0  ;;  %v121_v60 = vpop.permute.xlu1 %120 }
 0x12e   :  { %v254_v2 = vadd.f32 %v238_v59, %v121_v60 }
 0x12f   :  { %v990_v51 = vpack.c.bf16 %v468_v58, %v467_v62 }
 0x131   :  { %991 = vmatprep.subr.bf16.mxu0 %v990_v51 }
 0x132   :  { %v317_v55 = vpop.permute.xlu1 %316  ;;  %993 = vmatpush3.bf16.msra.mxu0 %v990_v51 }
 0x133   :  { %v338_v6 = vmul.f32 %v1315_v5, %v317_v55  ;;  %v474_v5 = vld [vmem:[%s1504_s3 + $0x18] sm:$0xff] }
 0x135   :  { %v354_v7 = vadd.f32 %v338_v6, %v254_v2 }
 0x137   :  { %v413_v10 = vpop.permute.xlu1 %412  ;;  %v454_v44 = vadd.f32 %v438_v61, %v354_v7 }
 0x138   :  { %v437_v14 = vmul.f32 %v1322_v12, %v413_v10  ;;  %v475_v12 = vld [vmem:[%s1504_s3 + $0x20] sm:$0xff] }
 0x139   :  { %v470_v4 = vmax.f32 %v454_v44, 0.0 }
 0x13a   :  { %v453_v3 = vadd.f32 %v437_v14, %v353_v11 }
 0x13c   :  { %v469_v15 = vmax.f32 %v453_v3, 0.0  ;;  %v506_v48 = vpop.permute.xlu1 %505 }
 0x13e   :  { %v994_v16 = vpack.c.bf16 %v470_v4, %v469_v15 }
 0x140   :  { %995 = vmatprep.subr.bf16.mxu0 %v994_v16 }
 0x141   :  { %997 = vmatpush3.bf16.msra.mxu0 %v994_v16 }
 0x142   :  { %v511_v28 = vpop.permute.xlu1 %510 }
 0x144   :  { %908 = vmatmul.mubr.f32.vlgmr.msra.gmra.mrb[0].mxu0 %v472_v9 }
 0x145   :  { %910 = vmatprep.mubr.f32.mxu0 %v473_v17 }
 0x146   :  { %v521_v30 = vpop.permute.xlu1 %520 }
 0x148   :  { %911 = vmatmul.mubr.f32.gmra.mrb[2].mxu0 %v474_v5  ;;  %v516_v29 = vpop.permute.xlu0 %515 }
 0x149   :  { %913 = vmatprep.mubr.f32.mxu0 %v475_v12 }
 0x14c   :  { %914 = vmatmul.mubr.f32.gmra.mrb[4].mxu0 %v476_v18  ;;  %v531_v56 = vpop.permute.xlu0 %530  ;;  %v526_v31 = vpop.permute.xlu1 %525 }
 0x14d   :  { %916 = vmatprep.mubr.f32.mxu0 %v477_v0 }
 0x150   :  { %917 = vmatmul.mubr.f32.gmra.mrb[6].mxu0 %v478_v19  ;;  %v541_v36 = vpop.permute.xlu0 %540  ;;  %v536_v40 = vpop.permute.xlu1 %535 }
 0x151   :  { %919 = vmatprep.mubr.f32.mxu0 %v479_v20 }
 0x154   :  { %920 = vmatmul.mubr.f32.gmra.mrb[8].mxu0 %v480_v21  ;;  %v551_v57 = vpop.permute.xlu0 %550  ;;  %v546_v60 = vpop.permute.xlu1 %545 }
 0x155   :  { %922 = vmatprep.mubr.f32.mxu0 %v481_v22 }
 0x158   :  { %923 = vmatmul.mubr.f32.gmra.mrb[10].mxu0 %v482_v23  ;;  %v561_v61 = vpop.permute.xlu0 %560  ;;  %v556_v10 = vpop.permute.xlu1 %555 }
 0x159   :  { %925 = vmatprep.mubr.f32.mxu0 %v483_v24 }
 0x15c   :  { %926 = vmatmul.mubr.f32.gmra.mrb[12].mxu0 %v484_v25  ;;  %v571_v5 = vpop.permute.xlu0 %570  ;;  %v566_v0 = vpop.permute.xlu1 %565 }
 0x15d   :  { %928 = vmatprep.mubr.f32.mxu0 %v485_v26 }
 0x160   :  { %929 = vmatmul.mubr.f32.gmra.mrb[14].mxu0 %v486_v27  ;;  %v581_v27 = vpop.permute.xlu0 %580 }
 0x217   :  { %v909_v32 = vpop.f32.mrb[0].mxu0 }
 0x218   :  { %v655_v33 = vadd.f32 %v909_v32, %v511_v28  ;;  %v649_v53 = vpop.f32.mrb[1].mxu0  ;;  %v576_v28 = vpop.permute.xlu1 %575 }
 0x219   :  { %v650_v34 = vadd.f32 %v649_v53, %v506_v48 }
 0x21a   :  { %v729_v35 = vmax.f32 %v655_v33, 0.0 }
 0x21b   :  { %v728_v37 = vmax.f32 %v650_v34, 0.0  ;;  %v912_v38 = vpop.f32.mrb[2].mxu0  ;;  %v744_v34 = vld [vmem:[%s1507_s5] sm:$0xff] }
 0x21c   :  { %v665_v41 = vadd.f32 %v912_v38, %v521_v30  ;;  %v659_v42 = vpop.f32.mrb[3].mxu0 }
 0x21d   :  { %v660_v45 = vadd.f32 %v659_v42, %v516_v29  ;;  %v999_v43 = vpack.c.bf16 %v729_v35, %v728_v37  ;;  %v749_v35 = vpop.permute.xlu1 %748 }
 0x21e   :  { %v731_v47 = vmax.f32 %v665_v41, 0.0 }
 0x21f   :  { %v730_v50 = vmax.f32 %v660_v45, 0.0  ;;  %v915_v52 = vpop.f32.mrb[4].mxu0  ;;  %1000 = vmatpush3.bf16.msra.mxu1 %v999_v43 }
 0x220   :  { %v675_v54 = vadd.f32 %v915_v52, %v531_v56  ;;  %v669_v39 = vpop.f32.mrb[5].mxu0  ;;  %1001 = vmatprep.subr.bf16.mxu1 %v1067_v46 }
 0x221   :  { %v1002_v62 = vpack.c.bf16 %v731_v47, %v730_v50  ;;  %v670_v58 = vadd.f32 %v669_v39, %v526_v31 }
 0x222   :  { %v733_v51 = vmax.f32 %v675_v54, 0.0 }
 0x223   :  { %v732_v63 = vmax.f32 %v670_v58, 0.0  ;;  %v918_v59 = vpop.f32.mrb[6].mxu0  ;;  %1003 = vmatpush3.bf16.msra.mxu1 %v1002_v62 }
 0x224   :  { %v685_v1 = vadd.f32 %v918_v59, %v541_v36  ;;  %v679_v55 = vpop.f32.mrb[7].mxu0  ;;  %1004 = vmatprep.subr.bf16.mxu1 %v1067_v46 }
 0x225   :  { %v1005_v2 = vpack.c.bf16 %v733_v51, %v732_v63  ;;  %v680_v6 = vadd.f32 %v679_v55, %v536_v40 }
 0x226   :  { %v735_v49 = vmax.f32 %v685_v1, 0.0 }
 0x227   :  { %v734_v7 = vmax.f32 %v680_v6, 0.0  ;;  %v921_v8 = vpop.f32.mrb[8].mxu0  ;;  %1006 = vmatpush3.bf16.msra.mxu1 %v1005_v2 }
 0x228   :  { %v695_v44 = vadd.f32 %v921_v8, %v551_v57  ;;  %v689_v11 = vpop.f32.mrb[9].mxu0  ;;  %1007 = vmatprep.subr.bf16.mxu1 %v1067_v46 }
 0x229   :  { %v1008_v14 = vpack.c.bf16 %v735_v49, %v734_v7  ;;  %v690_v3 = vadd.f32 %v689_v11, %v546_v60 }
 0x22a   :  { %v737_v4 = vmax.f32 %v695_v44, 0.0 }
 0x22b   :  { %v736_v15 = vmax.f32 %v690_v3, 0.0  ;;  %v924_v16 = vpop.f32.mrb[10].mxu0  ;;  %1009 = vmatpush3.bf16.msra.mxu1 %v1008_v14 }
 0x22c   :  { %v705_v9 = vadd.f32 %v924_v16, %v561_v61  ;;  %v699_v17 = vpop.f32.mrb[11].mxu0  ;;  %1010 = vmatprep.subr.bf16.mxu1 %v1067_v46 }
 0x22d   :  { %v1011_v12 = vpack.c.bf16 %v737_v4, %v736_v15  ;;  %v700_v18 = vadd.f32 %v699_v17, %v556_v10 }
 0x22e   :  { %v739_v19 = vmax.f32 %v705_v9, 0.0 }
 0x22f   :  { %v738_v20 = vmax.f32 %v700_v18, 0.0  ;;  %v927_v21 = vpop.f32.mrb[12].mxu0  ;;  %1012 = vmatpush3.bf16.msra.mxu1 %v1011_v12 }
 0x230   :  { %v715_v22 = vadd.f32 %v927_v21, %v571_v5  ;;  %v709_v23 = vpop.f32.mrb[13].mxu0  ;;  %1013 = vmatprep.subr.bf16.mxu1 %v1067_v46 }
 0x231   :  { %v1014_v24 = vpack.c.bf16 %v739_v19, %v738_v20  ;;  %v710_v25 = vadd.f32 %v709_v23, %v566_v0 }
 0x232   :  { %v741_v26 = vmax.f32 %v715_v22, 0.0 }
 0x233   :  { %v740_v13 = vmax.f32 %v710_v25, 0.0  ;;  %v930_v48 = vpop.f32.mrb[14].mxu0  ;;  %1015 = vmatpush3.bf16.msra.mxu1 %v1014_v24 }
 0x234   :  { %v725_v29 = vadd.f32 %v930_v48, %v581_v27  ;;  %v719_v30 = vpop.f32.mrb[15].mxu0  ;;  %1016 = vmatprep.subr.bf16.mxu1 %v1067_v46 }
 0x235   :  { %v1017_v56 = vpack.c.bf16 %v741_v26, %v740_v13  ;;  %v720_v31 = vadd.f32 %v719_v30, %v576_v28 }
 0x236   :  { %v743_v32 = vmax.f32 %v725_v29, 0.0 }
 0x237   :  { %v742_v33 = vmax.f32 %v720_v31, 0.0  ;;  %1018 = vmatpush3.bf16.msra.mxu1 %v1017_v56 }
 0x238   :  { %1019 = vmatprep.subr.bf16.mxu1 %v1067_v46 }
 0x239   :  { %v1020_v53 = vpack.c.bf16 %v743_v32, %v742_v33 }
 0x23b   :  { %1021 = vmatpush3.bf16.msra.mxu1 %v1020_v53 }
 0x23e   :  { %964 = vmatmul.mubr.f32.vlgmr.msra.gmra.mrb[0].mxu1 %v744_v34 }
 0x311   :  { %v817_v36 = vpop.f32.mrb[0].mxu1 }
 0x312   :  { %v818_v37 = vadd.f32 %v817_v36, %v749_v35  ;;  %v965_v38 = vpop.f32.mrb[1].mxu1 }
 0x314   :  { %821 = vst [vmem:[%s1508_s7] sm:$0xff] %v818_v37 }

</bundles_post_ra>
